<compile_context>
chip_gen: v7x
topology: tpu7x:2x2x1
jax: 0.10.0
libtpu: 0.0.40
codegen_flags: <defaults>
</compile_context>

<pallas_src>
import jax
import jax.numpy as jnp
from jax import lax
from jax.experimental import pallas as pl
from jax.experimental.pallas import tpu as pltpu


IN_FEATURES = 32 * 32 * 3   # 3072
OUT_FEATURES = 10

# Batch tile: 1024 * 3072 * 4 B = 12 MiB per buffer; double-buffered by the
# BlockSpec pipeline -> 24 MiB + ~0.12 MiB resident W.  Fits the 32 MiB scoped
# VMEM default on every generation (incl. v7x's 64 MiB physical VMEM).
DEFAULT_BLOCK_BATCH = 1024


def linear_kernel(x_ref, w_ref, b_ref, o_ref):
    # y = x @ W^T + b, contracting the shared K axis (axis 1 of both operands).
    # W stays in its natural (N, K) lane-dense layout; the MXU handles the
    # transposed-RHS contraction natively.
    y = lax.dot_general(
        x_ref[...],               # (TM, K)
        w_ref[...],               # (N,  K)
        dimension_numbers=(((1,), (1,)), ((), ())),
        preferred_element_type=jnp.float32,
    )
    o_ref[...] = (y + b_ref[...]).astype(o_ref.dtype)


def test_network_forward(x, weight, bias, *, block_batch=DEFAULT_BLOCK_BATCH):
    """x: (B, 3, 32, 32) float32; weight: (10, 3072); bias: (10,)."""
    B = x.shape[0]
    # flatten(x, 1): NCHW row-major flatten -> (B, 3072), same order as torch
    x_flat = x.reshape(B, IN_FEATURES)
    b2d = bias.reshape(1, OUT_FEATURES)

    if B <= block_batch:
        # Small batch: single grid step over full-array blocks.  Full-dim
        # blocks are legal even when B < 8; this regime is purely
        # dispatch-overhead bound so no tiling helps.
        tm = B
        x_in = x_flat
    else:
        # Large batch: stream x in (tm, K) tiles; pad B up to a multiple of tm
        # so every block is (8,128)-aligned, then slice the result back.
        tm = block_batch
        pad = (-B) % tm
        x_in = jnp.pad(x_flat, ((0, pad), (0, 0))) if pad else x_flat

    Bp = x_in.shape[0]
    grid = (Bp // tm,)

    flops = 2 * Bp * IN_FEATURES * OUT_FEATURES
    bytes_accessed = (
        Bp * IN_FEATURES * 4            # x
        + OUT_FEATURES * IN_FEATURES * 4  # W (resident, read once)
        + OUT_FEATURES * 4                # bias
        + Bp * OUT_FEATURES * 4           # out
    )

    out = pl.pallas_call(
        linear_kernel,
        out_shape=jax.ShapeDtypeStruct((Bp, OUT_FEATURES), jnp.float32),
        grid=grid,
        in_specs=[
            # x tile streams along the batch grid axis (double-buffered).
            pl.BlockSpec((tm, IN_FEATURES), lambda i: (i, 0)),
            # Weight + bias: constant index_map -> VMEM-resident, DMA'd once.
            pl.BlockSpec((OUT_FEATURES, IN_FEATURES), lambda i: (0, 0)),
            pl.BlockSpec((1, OUT_FEATURES), lambda i: (0, 0)),
        ],
        out_specs=pl.BlockSpec((tm, OUT_FEATURES), lambda i: (i, 0)),
        compiler_params=pltpu.CompilerParams(
            # Batch tiles are independent -> shard across v7x's 2 TCs.
            dimension_semantics=("parallel",),
        ),
        cost_estimate=pl.CostEstimate(
            flops=flops, bytes_accessed=bytes_accessed, transcendentals=0
        ),
    )(x_in, weight, b2d)

    return out[:B] if Bp != B else out


def init_params(key):
    """Deterministic init mimicking nn.Linear default (uniform +-1/sqrt(fan_in))."""
    kw, kb = jax.random.split(key)
    bound = 1.0 / jnp.sqrt(jnp.float32(IN_FEATURES))
    weight = jax.random.uniform(
        kw, (OUT_FEATURES, IN_FEATURES), jnp.float32, -bound, bound
    )
    bias = jax.random.uniform(kb, (OUT_FEATURES,), jnp.float32, -bound, bound)
    return weight, bias


if __name__ == "__main__":
    key = jax.random.PRNGKey(0)
    kx, kx2, kp = jax.random.split(key, 3)
    weight, bias = init_params(kp)

    # --- Small-batch path (single full-array block), matches the spec demo ---
    B = 2
    x = jax.random.normal(kx, (B, 3, 32, 32), jnp.float32)
    y = jax.block_until_ready(test_network_forward(x, weight, bias))
    y_ref = x.reshape(B, -1) @ weight.T + bias
    assert y.shape == (B, OUT_FEATURES)
    assert jnp.allclose(y, y_ref, atol=1e-4, rtol=1e-4)

    # --- Tiled/padded batch path (exercised with a tiny block_batch so it is
    #     cheap in the sandbox but covers the grid + padding + slicing logic) ---
    B2 = 20
    x2 = jax.random.normal(kx2, (B2, 3, 32, 32), jnp.float32)
    y2 = jax.block_until_ready(
        test_network_forward(x2, weight, bias, block_batch=8)
    )
    y2_ref = x2.reshape(B2, -1) @ weight.T + bias
    assert y2.shape == (B2, OUT_FEATURES)
    assert jnp.allclose(y2, y2_ref, atol=1e-4, rtol=1e-4)

    print("KERNEL_OK")
</pallas_src>

<mosaic_0001>
module attributes {stable_mosaic.version = 11 : i64} {
  func.func @linear_kernel(%arg0: i32, %arg1: memref<2x3072xf32, #tpu.memory_space<vmem>>, %arg2: memref<10x3072xf32, #tpu.memory_space<vmem>>, %arg3: memref<1x10xf32, #tpu.memory_space<vmem>>, %arg4: memref<2x10xf32, #tpu.memory_space<vmem>>) attributes {dimension_semantics = [#tpu.dimension_semantics<parallel>], iteration_bounds = array<i64: 1>, scalar_prefetch = 0 : i64, scratch_operands = 0 : i64, tpu.core_type = #tpu.core_type<tc>, window_params = [{transform_indices = @transform_0, window_bounds = array<i64: 2, 3072>}, {pipeline_mode = #tpu.pipeline_mode<synchronous>, transform_indices = @transform_1, window_bounds = array<i64: 10, 3072>}, {pipeline_mode = #tpu.pipeline_mode<synchronous>, transform_indices = @transform_2, window_bounds = array<i64: 1, 10>}, {transform_indices = @transform_3, window_bounds = array<i64: 2, 10>}]} {
    %c0 = arith.constant 0 : index
    %c0_0 = arith.constant 0 : index
    %0 = vector.load %arg1[%c0, %c0_0] : memref<2x3072xf32, #tpu.memory_space<vmem>>, vector<2x3072xf32>
    %c0_1 = arith.constant 0 : index
    %c0_2 = arith.constant 0 : index
    %1 = vector.load %arg2[%c0_1, %c0_2] : memref<10x3072xf32, #tpu.memory_space<vmem>>, vector<10x3072xf32>
    %cst = arith.constant dense<0.000000e+00> : vector<2x10xf32>
    %2 = tpu.matmul %0, %1, %cst {dimension_numbers = #tpu.dot_dimension_numbers<[1], [1], [0], [0], [0, 0, 1, 0], [], []>} : vector<2x3072xf32>, vector<10x3072xf32>, vector<2x10xf32> -> vector<2x10xf32>
    %c0_3 = arith.constant 0 : index
    %c0_4 = arith.constant 0 : index
    %3 = vector.load %arg3[%c0_3, %c0_4] : memref<1x10xf32, #tpu.memory_space<vmem>>, vector<1x10xf32>
    %4 = vector.broadcast %3 : vector<1x10xf32> to vector<2x10xf32>
    %5 = arith.addf %2, %4 : vector<2x10xf32>
    %c0_5 = arith.constant 0 : index
    %c0_6 = arith.constant 0 : index
    %6 = vector.load %arg4[%c0_5, %c0_6] : memref<2x10xf32, #tpu.memory_space<vmem>>, vector<2x10xf32>
    tpu.vector_store %arg4[%c0_5, %c0_6], %5 {strides = array<i32>} : memref<2x10xf32, #tpu.memory_space<vmem>>, vector<2x10xf32>,
    return
  }
  func.func @transform_0(%arg0: i32) -> (i32, i32) {
    %c0_i32 = arith.constant 0 : i32
    %c0_i32_0 = arith.constant 0 : i32
    return %arg0, %c0_i32 : i32, i32
  }
  func.func @transform_1(%arg0: i32) -> (i32, i32) {
    %c0_i32 = arith.constant 0 : i32
    %c0_i32_0 = arith.constant 0 : i32
    %c0_i32_1 = arith.constant 0 : i32
    return %c0_i32, %c0_i32_0 : i32, i32
  }
  func.func @transform_2(%arg0: i32) -> (i32, i32) {
    %c0_i32 = arith.constant 0 : i32
    %c0_i32_0 = arith.constant 0 : i32
    %c0_i32_1 = arith.constant 0 : i32
    return %c0_i32, %c0_i32_0 : i32, i32
  }
  func.func @transform_3(%arg0: i32) -> (i32, i32) {
    %c0_i32 = arith.constant 0 : i32
    %c0_i32_0 = arith.constant 0 : i32
    return %arg0, %c0_i32 : i32, i32
  }
}

</mosaic_0001>

<bundles_post_ra>
// kernel: tpu_custom_call.1
= control target key start
LH: loop header
LB: loop body
LE: loop exit
PB: predicated region body
PF: predicated region fallthrough
CT: control target
= control target key end

     0   :  { %8 = vsyncpa [#allocation3], 0  ;;  %s1333_s0 = inlined_call_operand.hbm [shape: f32[2,3072], index: 0, kind: input, shape index: {}]   ;;  %s1334_s1 = inlined_call_operand.hbm [shape: f32[10,3072], index: 1, kind: input, shape index: {}]   ;;  %s1335_s2 = inlined_call_operand.vmem [shape: f32[1,10], index: 2, kind: input, shape index: {}]   ;;  %s1336_s3 = inlined_call_operand.hbm [shape: f32[2,10], index: 3, kind: output, shape index: {}]  }
   0x1   :  { %9 = vsyncpa [#allocation6], 0 }
   0x2   :  { %10 = vsyncpa [#allocation4], 0  ;;  %s1247_s12 = smov [#allocation2]   ;;  %s1248_s14 = smov [#allocation5]  }
   0x3   :  { %s17_s13 = sshll.u32 %s1247_s12, 4  ;;  %s26_s15 = sshll.u32 %s1248_s14, 4  ;;  %s18_s13 = int_to_ptr.vmem [resolvable:$true] %s17_s13  ;;  %s1273_s15 = int_to_ptr.vmem [resolvable:$true] %s26_s15 }
   0x4   :  { %s1175_s18 = scalar_lea.hbm %s1333_s0, 768 }
   0x5   :  { %p1176_p0 = scmp.ne.s32.totalorder %s1333_s0, %s1175_s18  ;;  %p1179_p1 = scmp.lt.u32.totalorder %s1175_s18, %s1333_s0 }
   0x7   :  { %p1181_p2 = pnand %p1179_p1, %p1176_p0 }
   0x9   :  { %1184 = shalt.err (!%p1181_p2)
}
   0xa   :  { %s1185_s23 = scalar_lea.vmem %s18_s13, 768  ;;  %p1190_p4 = scmp.lt.s32.totalorder %s18_s13, %s18_s13 }
   0xb   :  { %p1186_p3 = scmp.ne.s32.totalorder %s18_s13, %s1185_s23  ;;  %p1191_p5 = scmp.lt.s32.totalorder %s1185_s23, %s1185_s23 }
   0xd   :  { %p1192_p6 = por %p1191_p5, %p1190_p4 }
   0xf   :  { %p1193_p7 = pnand %p1192_p6, %p1186_p3 }
  0x11   :  { %1196 = shalt.err (!%p1193_p7)
}
  0x12   :  { %20 = dma.hbm_to_vmem [thread:$0]  %s1333_s0, 768, %s18_s13, [#allocation3]  }
  0x13   :  { %s1197_s28 = scalar_lea.hbm %s1334_s1, 6144 }
  0x14   :  { %p1198_p8 = scmp.ne.s32.totalorder %s1334_s1, %s1197_s28  ;;  %p1201_p9 = scmp.lt.u32.totalorder %s1197_s28, %s1334_s1 }
  0x16   :  { %p1203_p10 = pnand %p1201_p9, %p1198_p8 }
  0x18   :  { %1206 = shalt.err (!%p1203_p10)
}
  0x19   :  { %s1207_s6 = scalar_lea.vmem %s1273_s15, 6144  ;;  %p1212_p12 = scmp.lt.s32.totalorder %s1273_s15, %s1273_s15 }
  0x1a   :  { %p1208_p11 = scmp.ne.s32.totalorder %s1273_s15, %s1207_s6  ;;  %p1213_p13 = scmp.lt.s32.totalorder %s1207_s6, %s1207_s6 }
  0x1c   :  { %p1214_p0 = por %p1213_p13, %p1212_p12 }
  0x1e   :  { %p1215_p1 = pnand %p1214_p0, %p1208_p11 }
  0x20   :  { %1218 = shalt.err (!%p1215_p1)
}
  0x21   :  { %s1249_s0 = smov 3072   ;;  %s1250_s7 = smov 192  }
  0x22   :  { %32 = dma.hbm_to_vmem [thread:$0]  %s1334_s1, 6144, %s1273_s15, [#allocation6], %s1249_s0, %s1249_s0, %s1250_s7  }
  0x23   :  { %1241 = dma.done.wait [#allocation3], 768  }
  0x24   :  { %1242 = vsyncadd [#allocation3], 4294966528 }
  0x25   :  { %1243 = dma.done.wait [#allocation6], 6144  }
  0x26   :  { %1244 = vsyncadd [#allocation6], 4294961152  ;;  %v112_v0 = vlaneseq  ;;  %v1251_v1 = vmov 1983009808   ;;  %v48_v6 = vld [vmem:[#allocation5 + $0x8] sm:$0xff]  ;;  %v47_v11 = vld [vmem:[#allocation5] sm:$0xff] }
  0x27   :  { %v110_v2 = vunpack.c.l.s4 %v1251_v1  ;;  %v72_v7 = vld [vmem:[#allocation5 + $0xc8] sm:$0x3]  ;;  %v71_v12 = vld [vmem:[#allocation5 + $0xc0] sm:$0x3]  ;;  %v41_v17 = vld [vmem:[#allocation2] sm:$0xff]  ;;  %s1252_s11 = smov [#allocation7]  }
  0x28   :  { %v113_v3 = vshrl.u32 %v112_v0, 7  ;;  %v60_v8 = vld [vmem:[#allocation5 + $0x68] sm:$0xff]  ;;  %v1093_v9 = vpack.c.bf16 %v72_v7, %v48_v6  ;;  %v1095_v14 = vpack.c.bf16 %v71_v12, %v47_v11  ;;  %v59_v15 = vld [vmem:[#allocation5 + $0x60] sm:$0xff]  ;;  %v108_v19 = vcombine.high %v41_v17, %v41_v17  ;;  %v50_v22 = vld [vmem:[#allocation5 + $0x18] sm:$0xff]  ;;  %s1082_s12 = sshll.u32 %s1252_s11, 4  ;;  %s1083_s12 = int_to_ptr.vmem [resolvable:$true] %s1082_s12 }
  0x29   :  { %v111_v4 = vunpack.c.0.s8 %v110_v2  ;;  %v84_v10 = vld [vmem:[#allocation5 + $0x128] sm:$0x3]  ;;  %v83_v16 = vld [vmem:[#allocation5 + $0x120] sm:$0x3]  ;;  %v74_v23 = vld [vmem:[#allocation5 + $0xd8] sm:$0x3]  ;;  %p1224_p3 = scmp.lt.s32.totalorder %s1083_s12, %s1083_s12 }
  0x2a   :  { %v1117_v13 = vpack.c.bf16 %v84_v10, %v60_v8  ;;  %1094 = vmatprep.subr.bf16.mxu1 %v1093_v9  ;;  %v1119_v18 = vpack.c.bf16 %v83_v16, %v59_v15  ;;  %v44_v21 = vld [vmem:[#allocation2 + $0x18] sm:$0xff]  ;;  %v1097_v26 = vpack.c.bf16 %v74_v23, %v50_v22  ;;  %v62_v27 = vld [vmem:[#allocation5 + $0x78] sm:$0xff]  ;;  %v49_v31 = vld [vmem:[#allocation5 + $0x10] sm:$0xff]  ;;  %vm1074_vm0 = vcmask 74752   ;;  %s1219_s13 = scalar_lea.vmem %s1083_s12, 32 }
  0x2b   :  { %v1304_v5 = vsub.s32 %v111_v4, %v113_v3  ;;  %1096 = vmatpush1.bf16.xpose.msra.mxu1 %v1095_v14  ;;  %v159_v24 = vcombine.high %v44_v21, %v44_v21  ;;  %v86_v28 = vld [vmem:[#allocation5 + $0x138] sm:$0x3]  ;;  %v73_v32 = vld [vmem:[#allocation5 + $0xd0] sm:$0x3]  ;;  %v52_v38 = vld [vmem:[#allocation5 + $0x28] sm:$0xff]  ;;  %p1220_p2 = scmp.ne.s32.totalorder %s1083_s12, %s1219_s13  ;;  %p1225_p4 = scmp.lt.s32.totalorder %s1219_s13, %s1219_s13 }
  0x2c   :  { %1118 = vmatprep.subr.bf16.mxu0 %v1117_v13  ;;  %v1121_v30 = vpack.c.bf16 %v86_v28, %v62_v27  ;;  %1098 = vmatprep.subr.bf16.mxu1 %v1097_v26  ;;  %v61_v35 = vld [vmem:[#allocation5 + $0x70] sm:$0xff]  ;;  %v76_v39 = vld [vmem:[#allocation5 + $0xe8] sm:$0x3]  ;;  %v1099_v40 = vpack.c.bf16 %v73_v32, %v49_v31  ;;  %v42_v47 = vld [vmem:[#allocation2 + $0x8] sm:$0xff] }
  0x2d   :  { %v115_v20 = vrot.slane %v41_v17, %v1304_v5  ;;  %v166_v25 = vrot.slane %v44_v21, %v1304_v5  ;;  %1120 = vmatpush1.bf16.xpose.msra.mxu0 %v1119_v18  ;;  %v122_v33 = vrot.slane %v108_v19, %v1304_v5  ;;  %v85_v36 = vld [vmem:[#allocation5 + $0x130] sm:$0x3]  ;;  %v173_v37 = vrot.slane %v159_v24, %v1304_v5  ;;  %v64_v41 = vld [vmem:[#allocation5 + $0x88] sm:$0xff]  ;;  %v51_v50 = vld [vmem:[#allocation5 + $0x20] sm:$0xff]  ;;  %p1226_p5 = por %p1225_p4, %p1224_p3 }
  0x2e   :  { %1122 = vmatprep.subr.bf16.mxu0 %v1121_v30  ;;  %v88_v42 = vld [vmem:[#allocation5 + $0x148] sm:$0x3]  ;;  %v1123_v43 = vpack.c.bf16 %v85_v36, %v61_v35  ;;  %v1101_v46 = vpack.c.bf16 %v76_v39, %v52_v38  ;;  %v45_v49 = vld [vmem:[#allocation2 + $0x20] sm:$0xff]  ;;  %v75_v51 = vld [vmem:[#allocation5 + $0xe0] sm:$0x3]  ;;  %v132_v52 = vrot.slane %v42_v47, %v1304_v5  ;;  %v125_v63 = vcombine.high %v42_v47, %v42_v47 }
  0x2f   :  { %v123_v29 = vcombine.high %v115_v20, %v115_v20  ;;  %v174_v34 = vcombine.high %v166_v25, %v166_v25  ;;  %v124_v44 = vcombine.high %v122_v33, %v122_v33  ;;  %v175_v45 = vcombine.high %v173_v37, %v173_v37  ;;  %v63_v53 = vld [vmem:[#allocation5 + $0x80] sm:$0xff]  ;;  %v54_v56 = vld [vmem:[#allocation5 + $0x38] sm:$0xff]  ;;  %v53_v4 = vld [vmem:[#allocation5 + $0x30] sm:$0xff]  ;;  %p1227_p6 = pnand %p1226_p5, %p1220_p2 }
  0x30   :  { %v1125_v48 = vpack.c.bf16 %v88_v42, %v64_v41  ;;  %v87_v54 = vld [vmem:[#allocation5 + $0x140] sm:$0x3]  ;;  %v183_v55 = vrot.slane %v45_v49, %v1304_v5  ;;  %v78_v57 = vld [vmem:[#allocation5 + $0xf8] sm:$0x3]  ;;  %v1103_v58 = vpack.c.bf16 %v75_v51, %v51_v50  ;;  %v140_v62 = vcombine.high %v132_v52, %v132_v52  ;;  %v77_v6 = vld [vmem:[#allocation5 + $0xf0] sm:$0x3] }
  0x31   :  { %298 = vmatprep.mubr.f32.mxu1 %v123_v29  ;;  %718 = vmatprep.mubr.f32.mxu0 %v174_v34  ;;  %v66_v59 = vld [vmem:[#allocation5 + $0x98] sm:$0xff]  ;;  %v1127_v61 = vpack.c.bf16 %v87_v54, %v63_v53  ;;  %v1105_v1 = vpack.c.bf16 %v78_v57, %v54_v56  ;;  %v176_v2 = vcombine.high %v45_v49, %v45_v49  ;;  %v65_v8 = vld [vmem:[#allocation5 + $0x90] sm:$0xff]  ;;  %v56_v11 = vld [vmem:[#allocation5 + $0x48] sm:$0xff] }
  0x32   :  { %299 = vmatmul.mubr.f32.vlgmr.msra.gmra.mrb[0].mxu1 %v115_v20  ;;  %v90_v60 = vld [vmem:[#allocation5 + $0x158] sm:$0x3]  ;;  %v191_v0 = vcombine.high %v183_v55, %v183_v55  ;;  %v139_v7 = vrot.slane %v125_v63, %v1304_v5  ;;  %v89_v9 = vld [vmem:[#allocation5 + $0x150] sm:$0x3]  ;;  %v80_v12 = vld [vmem:[#allocation5 + $0x108] sm:$0x3]  ;;  %v1107_v13 = vpack.c.bf16 %v77_v6, %v53_v4 }
  0x33   :  { %1100 = vmatpush1.bf16.xpose.msra.mxu1 %v1099_v40  ;;  %368 = vmatprep.mubr.f32.mxu1 %v124_v44  ;;  %v1129_v3 = vpack.c.bf16 %v90_v60, %v66_v59  ;;  %v190_v10 = vrot.slane %v176_v2, %v1304_v5  ;;  %v68_v14 = vld [vmem:[#allocation5 + $0xa8] sm:$0xff]  ;;  %v1131_v16 = vpack.c.bf16 %v89_v9, %v65_v8  ;;  %v43_v20 = vld [vmem:[#allocation2 + $0x10] sm:$0xff]  ;;  %v46_v22 = vld [vmem:[#allocation2 + $0x28] sm:$0xff] }
  0x34   :  { %719 = vmatmul.mubr.f32.vlgmr.msra.gmra.mrb[0].mxu0 %v166_v25  ;;  %1102 = vmatprep.subr.bf16.mxu1 %v1101_v46  ;;  %v92_v15 = vld [vmem:[#allocation5 + $0x168] sm:$0x3]  ;;  %v141_v17 = vcombine.high %v139_v7, %v139_v7  ;;  %v1109_v19 = vpack.c.bf16 %v80_v12, %v56_v11  ;;  %v55_v23 = vld [vmem:[#allocation5 + $0x40] sm:$0xff]  ;;  %v149_v25 = vrot.slane %v43_v20, %v1304_v5  ;;  %v58_v29 = vld [vmem:[#allocation5 + $0x58] sm:$0xff] }
  0x35   :  { %1124 = vmatpush1.bf16.xpose.msra.mxu0 %v1123_v43  ;;  %788 = vmatprep.mubr.f32.mxu0 %v175_v45  ;;  %v192_v18 = vcombine.high %v190_v10, %v190_v10  ;;  %v1133_v21 = vpack.c.bf16 %v92_v15, %v68_v14  ;;  %v79_v24 = vld [vmem:[#allocation5 + $0x100] sm:$0x3]  ;;  %v200_v28 = vrot.slane %v46_v22, %v1304_v5  ;;  %v82_v30 = vld [vmem:[#allocation5 + $0x118] sm:$0x3]  ;;  %v57_v41 = vld [vmem:[#allocation5 + $0x50] sm:$0xff] }
  0x36   :  { %1126 = vmatprep.subr.bf16.mxu0 %v1125_v48  ;;  %v67_v26 = vld [vmem:[#allocation5 + $0xa0] sm:$0xff]  ;;  %v1111_v31 = vpack.c.bf16 %v79_v24, %v55_v23  ;;  %v70_v32 = vld [vmem:[#allocation5 + $0xb8] sm:$0xff]  ;;  %v157_v35 = vcombine.high %v149_v25, %v149_v25  ;;  %v142_v36 = vcombine.high %v43_v20, %v43_v20  ;;  %v1113_v38 = vpack.c.bf16 %v82_v30, %v58_v29  ;;  %v81_v42 = vld [vmem:[#allocation5 + $0x110] sm:$0x3] }
  0x37   :  { %v91_v27 = vld [vmem:[#allocation5 + $0x160] sm:$0x3]  ;;  %v193_v39 = vcombine.high %v46_v22, %v46_v22  ;;  %v69_v44 = vld [vmem:[#allocation5 + $0xb0] sm:$0xff]  ;;  %v1115_v47 = vpack.c.bf16 %v81_v42, %v57_v41 }
  0x38   :  { %v1135_v34 = vpack.c.bf16 %v91_v27, %v67_v26  ;;  %v156_v43 = vrot.slane %v142_v36, %v1304_v5  ;;  %v93_v45 = vld [vmem:[#allocation5 + $0x170] sm:$0x3] }
  0x39   :  { %v207_v46 = vrot.slane %v193_v39, %v1304_v5  ;;  %v1139_v48 = vpack.c.bf16 %v93_v45, %v69_v44  ;;  %v1092_v51 = vld [vmem:[%s1335_s2] ss:$0 sm:$0xff] }
  0x3a   :  { %369 = vmatmul.mubr.f32.vlgmr.msra.gmra.mrb[0].mxu1 %v122_v33  ;;  %v94_v33 = vld [vmem:[#allocation5 + $0x178] sm:$0x3]  ;;  %v158_v49 = vcombine.high %v156_v43, %v156_v43 }
  0x3b   :  { %1104 = vmatpush1.bf16.xpose.msra.mxu1 %v1103_v58  ;;  %438 = vmatprep.mubr.f32.mxu1 %v140_v62  ;;  %v1137_v40 = vpack.c.bf16 %v94_v33, %v70_v32  ;;  %v209_v50 = vcombine.high %v207_v46, %v207_v46 }
  0x3c   :  { %789 = vmatmul.mubr.f32.vlgmr.msra.gmra.mrb[0].mxu0 %v173_v37  ;;  %1106 = vmatprep.subr.bf16.mxu1 %v1105_v1  ;;  %v208_v37 = vcombine.high %v200_v28, %v200_v28 }
  0x3d   :  { %1128 = vmatpush1.bf16.xpose.msra.mxu0 %v1127_v61  ;;  %858 = vmatprep.mubr.f32.mxu0 %v191_v0 }
  0x3e   :  { %1130 = vmatprep.subr.bf16.mxu0 %v1129_v3 }
  0x42   :  { %439 = vmatmul.mubr.f32.vlgmr.msra.gmra.mrb[0].mxu1 %v132_v52 }
  0x43   :  { %1108 = vmatpush1.bf16.xpose.msra.mxu1 %v1107_v13  ;;  %508 = vmatprep.mubr.f32.mxu1 %v141_v17 }
  0x44   :  { %859 = vmatmul.mubr.f32.vlgmr.msra.gmra.mrb[0].mxu0 %v183_v55  ;;  %1110 = vmatprep.subr.bf16.mxu1 %v1109_v19 }
  0x45   :  { %1132 = vmatpush1.bf16.xpose.msra.mxu0 %v1131_v16  ;;  %928 = vmatprep.mubr.f32.mxu0 %v192_v18 }
  0x46   :  { %1134 = vmatprep.subr.bf16.mxu0 %v1133_v21 }
  0x4a   :  { %509 = vmatmul.mubr.f32.vlgmr.msra.gmra.mrb[0].mxu1 %v139_v7 }
  0x4b   :  { %1112 = vmatpush1.bf16.xpose.msra.mxu1 %v1111_v31  ;;  %578 = vmatprep.mubr.f32.mxu1 %v157_v35 }
  0x4c   :  { %929 = vmatmul.mubr.f32.vlgmr.msra.gmra.mrb[0].mxu0 %v190_v10  ;;  %1114 = vmatprep.subr.bf16.mxu1 %v1113_v38 }
  0x4d   :  { %1136 = vmatpush1.bf16.xpose.msra.mxu0 %v1135_v34  ;;  %998 = vmatprep.mubr.f32.mxu0 %v208_v37 }
  0x4e   :  { %1138 = vmatprep.subr.bf16.mxu0 %v1137_v40 }
  0x52   :  { %579 = vmatmul.mubr.f32.vlgmr.msra.gmra.mrb[0].mxu1 %v149_v25 }
  0x53   :  { %1116 = vmatpush1.bf16.xpose.msra.mxu1 %v1115_v47  ;;  %648 = vmatprep.mubr.f32.mxu1 %v158_v49 }
  0x54   :  { %999 = vmatmul.mubr.f32.vlgmr.msra.gmra.mrb[0].mxu0 %v200_v28 }
  0x55   :  { %1140 = vmatpush1.bf16.xpose.msra.mxu0 %v1139_v48  ;;  %1068 = vmatprep.mubr.f32.mxu0 %v209_v50 }
  0x5a   :  { %649 = vmatmul.mubr.f32.vlgmr.msra.gmra.mrb[0].mxu1 %v156_v43 }
  0x5c   :  { %1069 = vmatmul.mubr.f32.vlgmr.msra.gmra.mrb[0].mxu0 %v207_v46 }
 0x12d   :  { %v650_v52 = vpop.f32.mrb[0].mxu1 }
 0x12e   :  { %v1141_v5 = vadd.f32 %v1092_v51, %v650_v52  ;;  %v652_v54 = vpop.f32.mrb[1].mxu1 }
 0x12f   :  { %v1070_v53 = vpop.f32.mrb[0].mxu0 }
 0x130   :  { %v1072_v55 = vpop.f32.mrb[1].mxu0  ;;  %v1142_v56 = vadd.f32 %v1141_v5, %v1070_v53 }
 0x132   :  { %1075 = vst.msk [vmem:[#allocation7] sm:$0x3] %vm1074_vm0, %v1142_v56 }
 0x133   :  { %1230 = shalt.err (!%p1227_p6)
}
 0x134   :  { %s1231_s15 = scalar_lea.hbm %s1336_s3, 32 }
 0x135   :  { %p1232_p7 = scmp.ne.s32.totalorder %s1336_s3, %s1231_s15  ;;  %p1235_p8 = scmp.lt.u32.totalorder %s1231_s15, %s1336_s3 }
 0x137   :  { %p1237_p9 = pnand %p1235_p8, %p1232_p7 }
 0x139   :  { %1240 = shalt.err (!%p1237_p9)
}
 0x13a   :  { %1085 = dma.vmem_to_hbm [thread:$0]  %s1083_s12, 32, %s1336_s3, [#allocation4]  }
 0x13b   :  { %1245 = dma.done.wait [#allocation4], 32  }
 0x13c   :  { %1246 = vsyncadd [#allocation4], 4294967264 }
 0x13d   :  { %1089 = vsyncpa [#allocation3], 1 }
 0x13e   :  { %1090 = vsyncpa [#allocation6], 1 }
 0x13f   :  { %1091 = vsyncpa [#allocation4], 1 }

</bundles_post_ra>
